<compile_context>
chip_gen: v6e
topology: v6e:2x2x1
jax: 0.10.0
libtpu: 0.0.40
codegen_flags: <defaults>
</compile_context>

<pallas_src>
import jax
import jax.numpy as jnp
from jax import lax
from jax.experimental import pallas as pl
from jax.experimental.pallas import tpu as pltpu


def ws_linear_kernel(x_ref, wt_ref, b_ref, o_ref):
    """One batch tile of WSLinear.

    x_ref : (block_b, d_in)   activations (bf16 preferred; cast only if needed)
    wt_ref: (d_in, d_out)     gain-folded, pre-transposed weights (bf16, VMEM-resident)
    b_ref : (1, d_out)        gain-folded bias (f32, VMEM-resident)
    o_ref : (block_b, d_out)  output (f32 or bf16)
    """
    x = x_ref[...]
    if x.dtype != wt_ref.dtype:
        x = x.astype(wt_ref.dtype)
    acc = jnp.dot(x, wt_ref[...], preferred_element_type=jnp.float32)
    o_ref[...] = (acc + b_ref[...]).astype(o_ref.dtype)


def fold_ws_linear_params(weight, bias, *, lr_scaler=1.0, param_dtype=jnp.bfloat16):
    """Fold gains + transpose into the parameters.  Call ONCE at param-init time.

    weight: (d_out, d_in) as in nn.Linear;  bias: (d_out,) (zeros for bias_init=None).
    Returns wt: (d_in, d_out) = weight.T * weight_gain   (param_dtype)
            b : (1, d_out)    = bias * bias_gain         (f32)
    """
    d_out, d_in = weight.shape
    weight_gain = lr_scaler / (d_in ** 0.5)
    bias_gain = lr_scaler
    wt = (jnp.transpose(weight).astype(jnp.float32) * weight_gain).astype(param_dtype)
    b = (bias.astype(jnp.float32) * bias_gain).reshape(1, d_out)
    return wt, b


def _pick_block_b(B, block_b):
    """Largest-tile heuristic that (a) never exceeds B, (b) keeps multiple-of-8
    blocks, (c) gives >= 2 tiles when B is big enough (feeds both v7x TCs)."""
    block_b = min(block_b, B)
    if B >= 16 and pl.cdiv(B, block_b) < 2:
        block_b = ((B + 1) // 2 + 7) // 8 * 8          # two roughly even tiles
    if block_b < B:
        block_b = max(8, block_b // 8 * 8)             # (8,128) tiling constraint
    return block_b


def ws_linear(x, wt, b, *, block_b=512, out_dtype=jnp.float32):
    """y = x @ wt + b.  Batch-tiled 1-D grid; weights/bias stay VMEM-resident."""
    B, d_in = x.shape
    d_in_w, d_out = wt.shape
    assert d_in == d_in_w, (d_in, d_in_w)
    assert b.shape == (1, d_out), b.shape

    block_b = _pick_block_b(B, block_b)
    nb = pl.cdiv(B, block_b)                           # ragged last tile handled by Pallas

    bytes_accessed = (
        B * d_in * x.dtype.itemsize
        + d_in * d_out * wt.dtype.itemsize
        + d_out * b.dtype.itemsize
        + B * d_out * jnp.dtype(out_dtype).itemsize
    )

    return pl.pallas_call(
        ws_linear_kernel,
        out_shape=jax.ShapeDtypeStruct((B, d_out), out_dtype),
        grid_spec=pltpu.PrefetchScalarGridSpec(
            num_scalar_prefetch=0,
            grid=(nb,),
            in_specs=[
                # batch tile of activations: default double-buffered pipeline
                pl.BlockSpec((block_b, d_in), lambda i: (i, 0)),
                # weights: constant index -> DMA'd once; single-buffered (no wasted copy)
                pl.BlockSpec((d_in, d_out), lambda i: (0, 0),
                             pipeline_mode=pl.Buffered(1)),
                # bias: constant index, single-buffered
                pl.BlockSpec((1, d_out), lambda i: (0, 0),
                             pipeline_mode=pl.Buffered(1)),
            ],
            out_specs=pl.BlockSpec((block_b, d_out), lambda i: (i, 0)),
        ),
        compiler_params=pltpu.CompilerParams(
            dimension_semantics=("parallel",),          # shard batch tiles across TCs
            vmem_limit_bytes=48 * 1024 * 1024,          # ~75% of v7x's 64 MiB physical
        ),
        cost_estimate=pl.CostEstimate(
            flops=2 * B * d_in * d_out,
            bytes_accessed=bytes_accessed,
            transcendentals=0,
        ),
    )(x, wt, b)


def ws_linear_ref(x, weight, bias, *, lr_scaler=1.0):
    """Pure-JAX f32 reference mirroring the PyTorch forward."""
    d_in = weight.shape[1]
    weight_gain = lr_scaler / (d_in ** 0.5)
    bias_gain = lr_scaler
    y = jnp.dot(x.astype(jnp.float32) * weight_gain,
                weight.astype(jnp.float32).T,
                precision=lax.Precision.HIGHEST)
    return y + (bias.astype(jnp.float32) * bias_gain)[None, :]


if __name__ == "__main__":
    # MXU/lane-friendly shapes: 1024 rows tiled as 2 x 512 (>= 2 tiles -> both v7x TCs),
    # 256 -> 256 features (256-aligned N/K for the v6e/v7x 2x256x256 MXU).
    B, D_IN, D_OUT = 1024, 256, 256
    LR_SCALER = 0.01
    BIAS_INIT = 0.5     # PyTorch: bias = zeros_like(...).fill_(bias_init)

    key = jax.random.PRNGKey(0)
    kx, kw = jax.random.split(key, 2)
    x_f32 = jax.random.normal(kx, (B, D_IN), dtype=jnp.float32)
    weight = jax.random.normal(kw, (D_OUT, D_IN), dtype=jnp.float32)   # nn.init.normal_
    bias = jnp.full((D_OUT,), BIAS_INIT, dtype=jnp.float32)

    # Fold gains / transpose once, outside the per-call hot path.
    wt, b = fold_ws_linear_params(weight, bias, lr_scaler=LR_SCALER)

    # Activations are fed to the kernel at bf16 (deliberate trade-off: halves the
    # dominant HBM stream; cast would normally be fused into the producer op).
    x_bf16 = x_f32.astype(jnp.bfloat16)

    out = ws_linear(x_bf16, wt, b, block_b=512, out_dtype=jnp.float32)
    out = jax.block_until_ready(out)
    assert out.shape == (B, D_OUT) and out.dtype == jnp.float32

    # Tight check against a reference using the same bf16 operands (kernel correctness).
    ref_bf16 = jnp.dot(x_bf16.astype(jnp.float32),
                       wt.astype(jnp.float32),
                       precision=lax.Precision.HIGHEST) + b
    assert jnp.allclose(out, ref_bf16, atol=1e-4, rtol=1e-4), "mismatch vs bf16-operand reference"

    # Loose check against the full-f32 PyTorch-equivalent reference
    # (bf16 MXU operands are a deliberate precision trade-off).
    ref_f32 = ws_linear_ref(x_f32, weight, bias, lr_scaler=LR_SCALER)
    assert jnp.allclose(out, ref_f32, atol=1e-3, rtol=5e-2), "mismatch vs f32 reference"

    # Also exercise the bf16-output path (halved writeback for bf16 consumers).
    out_bf16 = jax.block_until_ready(
        ws_linear(x_bf16, wt, b, block_b=512, out_dtype=jnp.bfloat16))
    assert out_bf16.dtype == jnp.bfloat16
    assert jnp.allclose(out_bf16.astype(jnp.float32), out, atol=1e-3, rtol=3e-2), \
        "bf16-output path mismatch"

    print("KERNEL_OK")
</pallas_src>

<mosaic_0001>
module attributes {stable_mosaic.version = 11 : i64} {
  func.func @ws_linear_kernel(%arg0: i32, %arg1: memref<512x256xbf16, #tpu.memory_space<vmem>>, %arg2: memref<256x256xbf16, #tpu.memory_space<vmem>>, %arg3: memref<1x256xf32, #tpu.memory_space<vmem>>, %arg4: memref<512x256xf32, #tpu.memory_space<vmem>>) attributes {dimension_semantics = [#tpu.dimension_semantics<parallel>], iteration_bounds = array<i64: 2>, scalar_prefetch = 0 : i64, scratch_operands = 0 : i64, tpu.core_type = #tpu.core_type<tc>, window_params = [{transform_indices = @transform_0, window_bounds = array<i64: 512, 256>}, {pipeline_mode = #tpu.pipeline_mode<synchronous>, transform_indices = @transform_1, window_bounds = array<i64: 256, 256>}, {pipeline_mode = #tpu.pipeline_mode<synchronous>, transform_indices = @transform_2, window_bounds = array<i64: 1, 256>}, {transform_indices = @transform_3, window_bounds = array<i64: 512, 256>}]} {
    %c0 = arith.constant 0 : index
    %c0_0 = arith.constant 0 : index
    %0 = vector.load %arg1[%c0, %c0_0] : memref<512x256xbf16, #tpu.memory_space<vmem>>, vector<512x256xbf16>
    %c0_1 = arith.constant 0 : index
    %c0_2 = arith.constant 0 : index
    %1 = vector.load %arg2[%c0_1, %c0_2] : memref<256x256xbf16, #tpu.memory_space<vmem>>, vector<256x256xbf16>
    %cst = arith.constant dense<0.000000e+00> : vector<512x256xf32>
    %2 = tpu.matmul %0, %1, %cst {dimension_numbers = #tpu.dot_dimension_numbers<[1], [0], [0], [1], [0, 0, 1, 1], [], []>} : vector<512x256xbf16>, vector<256x256xbf16>, vector<512x256xf32> -> vector<512x256xf32>
    %c0_3 = arith.constant 0 : index
    %c0_4 = arith.constant 0 : index
    %3 = vector.load %arg3[%c0_3, %c0_4] : memref<1x256xf32, #tpu.memory_space<vmem>>, vector<1x256xf32>
    %4 = vector.broadcast %3 : vector<1x256xf32> to vector<512x256xf32>
    %5 = arith.addf %2, %4 : vector<512x256xf32>
    %c0_5 = arith.constant 0 : index
    %c0_6 = arith.constant 0 : index
    %6 = vector.load %arg4[%c0_5, %c0_6] : memref<512x256xf32, #tpu.memory_space<vmem>>, vector<512x256xf32>
    tpu.vector_store %arg4[%c0_5, %c0_6], %5 {strides = array<i32>} : memref<512x256xf32, #tpu.memory_space<vmem>>, vector<512x256xf32>,
    return
  }
  func.func @transform_0(%arg0: i32) -> (i32, i32) {
    %c0_i32 = arith.constant 0 : i32
    %c0_i32_0 = arith.constant 0 : i32
    return %arg0, %c0_i32 : i32, i32
  }
  func.func @transform_1(%arg0: i32) -> (i32, i32) {
    %c0_i32 = arith.constant 0 : i32
    %c0_i32_0 = arith.constant 0 : i32
    %c0_i32_1 = arith.constant 0 : i32
    return %c0_i32, %c0_i32_0 : i32, i32
  }
  func.func @transform_2(%arg0: i32) -> (i32, i32) {
    %c0_i32 = arith.constant 0 : i32
    %c0_i32_0 = arith.constant 0 : i32
    %c0_i32_1 = arith.constant 0 : i32
    return %c0_i32, %c0_i32_0 : i32, i32
  }
  func.func @transform_3(%arg0: i32) -> (i32, i32) {
    %c0_i32 = arith.constant 0 : i32
    %c0_i32_0 = arith.constant 0 : i32
    return %arg0, %c0_i32 : i32, i32
  }
}

</mosaic_0001>

<bundles_post_ra>
// kernel: tpu_custom_call.1
= control target key start
LH: loop header
LB: loop body
LE: loop exit
PB: predicated region body
PF: predicated region fallthrough
CT: control target
= control target key end

     0   :  { %8 = vsyncpa [#allocation3], 0  ;;  %s2396_s0 = inlined_call_operand.hbm [shape: bf16[1024,256], index: 0, kind: input, shape index: {}]   ;;  %s2397_s1 = inlined_call_operand.hbm [shape: bf16[256,256], index: 1, kind: input, shape index: {}]   ;;  %s2398_s2 = inlined_call_operand.vmem [shape: f32[1,256], index: 2, kind: input, shape index: {}]   ;;  %s2399_s3 = inlined_call_operand.hbm [shape: f32[1024,256], index: 3, kind: output, shape index: {}]  }
   0x1   :  { %10 = vsyncpa [#allocation3 + $0x1], 0 }
   0x2   :  { %11 = vsyncpa [#allocation6], 0 }
   0x3   :  { %12 = vsyncpa [#allocation4], 0 }
   0x4   :  { %14 = vsyncpa [#allocation4 + $0x1], 0  ;;  %s1880_s12 = smov 0   ;;  %s1882_s13 = smov 0  }
   0x5   :  { %s1884_s14 = smov 0   ;;  %s1886_s15 = smov 0  }
   0x6 LB: > { %s1901_s16 = sadd.s32 4294967295, %s1851_s15   ;;  %s1374_s17 = sadd.s32 4294967294, %s1851_s15   ;;  %s1851_s15 = sphi %s1886_s15, %s2421_s15   ;;  %s1847_s14 = sphi %s1884_s14, %s2420_s14   ;;  %s1843_s13 = sphi %s1882_s13, %s2419_s13   ;;  %s1839_s12 = sphi %s1880_s12, %s2418_s12  }
   0x7   : > { %p40_p0 = scmp.ne.s32.totalorder %s1843_s13, %s1839_s12  ;;  %p2400_p1 = scmp.eq.s32.totalorder %s1901_s16, 0 }
   0x8   : > { %p112_p3 = scmp.eq.s32.totalorder %s1374_s17, 1  ;;  %p1375_p5 = scmp.ge.s32.totalorder %s1851_s15, 1 }
   0x9   : > { %p1910_p4 = por %p2400_p1, %p40_p0  ;;  %p119_p7 = scmp.lt.s32.totalorder %s1851_s15, 3 }
   0xa   : > { %p1915_p6 = por %p112_p3, %p40_p0  ;;  %s1853_s21 = smov [#allocation5]  }
   0xb   : > { %s2404_s18 = scalar_select %p1910_p4, 1, 0 }
   0xc   : > { %s2405_s19 = scalar_select %p1915_p6, 1, 0 }
   0xd   : > { %p1920_p8 = pnand %p1375_p5, %p119_p7  ;;  %s131_s22 = sshll.u32 %s1853_s21, 4  ;;  %s132_s22 = int_to_ptr.vmem [resolvable:$true] %s131_s22 }
   0xe   : > { %s1934_s24 = sadd.s32 1, %s1851_s15   ;;  %s27_s25 = sadd.s32 1, %s1847_s14 }
   0xf   : > { %s2406_s20 = scalar_select %p1920_p8, 1, 0 }
  0x10   : > { %p1532_p9 = pneg %p1920_p8  ;;  %s24_s26 = ssub.s32 %s1851_s15, %s1934_s24 }
  0x11   : > { %s1740_s27 = scalar_lea.vmem %s132_s22, 4096  ;;  %p1748_p5 = scmp.lt.s32.totalorder %s132_s22, %s132_s22 }
  0x12   : > { %p1929_p11 = pnand %p1532_p9, %p2400_p1  ;;  %p1741_p13 = scmp.ne.s32.totalorder %s132_s22, %s1740_s27 }
  0x13   : > { %p1749_p7 = scmp.lt.s32.totalorder %s1740_s27, %s1740_s27 }
  0x14   : > { %p1731_p12 = pneg %p1929_p11 }
  0x15   : > { %p1750_p10 = por %p1749_p7, %p1748_p5 }
  0x16   : > { %p1743_p0 = pnand %p1741_p13, %p1731_p12 }
  0x18   : > { %p1744_p3 = pneg %p1743_p0 }
  0x1a   : > { %p1751_p2 = pnand %p1750_p10, %p1744_p3 }
  0x1c   : > { %1754 = shalt.err (!%p1751_p2)
}
  0x1d   : > { %s1854_s28 = smov 128   ;;  %s1855_s29 = smov 8  }
  0x1e   : > { %1535 = dma.hbm_to_vmem [thread:$0]  (!%p1929_p11), %s2397_s1, 4096, %s132_s22, [#allocation6], %s1854_s28, %s1854_s28, %s1855_s29  }
  0x1f   : > { %p25_p2 = scmp.eq.s32.totalorder %s24_s26, 0  ;;  %p34_p9 = scmp.ne.s32.totalorder %s1847_s14, %s1843_s13 }
  0x20   : > { %p35_p10 = scmp.eq.s32.totalorder %s1851_s15, 0  ;;  %p1545_p12 = scmp.lt.s32.totalorder %s1851_s15, 2 }
  0x21   : > { %s1954_s5 = scalar_select %p25_p2, %s1847_s14, %s27_s25  }
  0x22   : > { %p36_p13 = por %p35_p10, %p34_p9  ;;  %p2408_p0 = scmp.eq.s32.totalorder %s1901_s16, 1 }
  0x23   : > { %s148_s7 = sand.u32 1, %s1847_s14   ;;  %s1489_s8 = sshll.u32 %s1851_s15, 13 }
  0x24   : > { %p1958_p3 = por %p2408_p0, %p34_p9  ;;  %s1378_s9 = sshll.u32 %s148_s7, 9 }
  0x25   : > { %s1967_s17 = scalar_lea.hbm %s2396_s0, %s1489_s8  ;;  %s152_s21 = scalar_lea.vmem [#allocation2], %s1378_s9 }
  0x26   : > { %s2409_s6 = scalar_select %p1958_p3, 1, 0 }
  0x27   : > { %s160_s22 = sshll.u32 %s152_s21, 4  ;;  %p1969_p11 = pnand %p1545_p12, %p36_p13  ;;  %s1973_s22 = int_to_ptr.vmem [resolvable:$true] %s160_s22 }
  0x28   : > { %s1975_s25 = scalar_lea.sflag [#allocation3], %s148_s7  ;;  %s1755_s26 = scalar_lea.hbm %s1967_s17, 8192 }
  0x29   : > { %p1756_p5 = scmp.ne.s32.totalorder %s1967_s17, %s1755_s26  ;;  %p1757_p7 = pneg %p1969_p11 }
  0x2a   : > { %s1760_s4 = scalar_lea.hbm %s2396_s0, 16384  ;;  %p1761_p10 = scmp.lt.s32.totalorder %s1967_s17, %s2396_s0 }
  0x2b   : > { %p1758_p2 = pnand %p1757_p7, %p1756_p5  ;;  %p1762_p12 = scmp.lt.s32.totalorder %s1760_s4, %s1755_s26 }
  0x2d   : > { %p1759_p9 = pneg %p1758_p2  ;;  %p1763_p13 = por %p1762_p12, %p1761_p10 }
  0x2f   : > { %p1764_p0 = pnand %p1763_p13, %p1759_p9 }
  0x31   : > { %1767 = shalt.err (!%p1764_p0)
}
  0x32   : > { %s1768_s7 = scalar_lea.vmem %s1973_s22, 8192  ;;  %s1856_s10 = smov [#allocation2]  }
  0x33   : > { %p1769_p1 = scmp.ne.s32.totalorder %s1973_s22, %s1768_s7  ;;  %s1773_s11 = sshll.u32 %s1856_s10, 4  ;;  %s1774_s11 = int_to_ptr.vmem [resolvable:$false] %s1773_s11 }
  0x34   : > { %s1775_s21 = scalar_lea.vmem %s1774_s11, 16384  ;;  %p1776_p2 = scmp.lt.s32.totalorder %s1973_s22, %s1774_s11 }
  0x35   : > { %p1771_p6 = pnand %p1769_p1, %p1757_p7  ;;  %p1777_p3 = scmp.lt.s32.totalorder %s1775_s21, %s1768_s7 }
  0x37   : > { %p1772_p5 = pneg %p1771_p6  ;;  %p1778_p4 = por %p1777_p3, %p1776_p2 }
  0x39   : > { %p1779_p8 = pnand %p1778_p4, %p1772_p5 }
  0x3b   : > { %1782 = shalt.err (!%p1779_p8)
}
  0x3c   : > { %1539 = dma.hbm_to_vmem [thread:$0]  (!%p1969_p11), %s1967_s17, 8192, %s1973_s22, %s1975_s25, %s1854_s28, %s1854_s28, %s1855_s29  }
  0x3d   : > { %p2411_p1 = scmp.ne.s32.totalorder %s2406_s20, 0 }
  0x3e   : > { %s2002_s26 = sand.u32 (!%p2411_p1), 1, %s1843_s13   ;;  %p2412_p4 = scmp.ne.s32.totalorder (!%p2411_p1), %s2404_s18, 0 }
  0x3f   : > { %172 = sbr.rel (%p2411_p1) target bundleno = 472 (0x1d8), region = 32  ;;  %s1383_s27 = sshll.u32 (!%p2411_p1), %s2002_s26, 9 }
  0x40   : > { %s175_s30 = scalar_lea.sflag (!%p2411_p1), [#allocation3], %s2002_s26  ;;  %s2006_s4 = scalar_lea.vmem (!%p2411_p1), [#allocation2], %s1383_s27 }
  0x44   : > { %1826 = dma.done.wait (%p2412_p4), %s175_s30, 8192  }
  0x45   : > { %1828 = vsyncadd (%p2412_p4), %s175_s30, 4294959104  ;;  %p2413_p6 = scmp.eq.s32.totalorder %s1901_s16, 0 }
  0x47   : > { %1830 = dma.done.wait (%p2413_p6), [#allocation6], 4096   ;;  %p2414_p8 = pmov %p2413_p6 }
  0x48   : > { %v1585_v0 = vld [vmem:[#allocation5 + $0x74] ss:$8 sps:$4 sm:$0xff]   ;;  %v1587_v1 = vld [vmem:[#allocation5 + $0x70] ss:$8 sps:$4 sm:$0xff]   ;;  %v1588_v2 = vld [vmem:[#allocation5 + $0x64] ss:$8 sps:$4 sm:$0xff]  }
  0x49   : > { %1832 = vsyncadd (%p2414_p8), [#allocation6], 4294963200  ;;  %795 = vmatprep.subr.bf16.mxu0 %v1585_v0  ;;  %1492 = vmatprep.subr.bf16.mxu1 %v1585_v0  ;;  %v1590_v3 = vld [vmem:[#allocation5 + $0x60] ss:$8 sps:$4 sm:$0xff]   ;;  %v1591_v4 = vld [vmem:[#allocation5 + $0x54] ss:$8 sps:$4 sm:$0xff]  }
  0x4a   : > { %796 = vmatpush1.bf16.msra.mxu0 %v1587_v1  ;;  %1508 = vmatpush1.bf16.msra.mxu1 %v1587_v1  ;;  %v1593_v5 = vld [vmem:[#allocation5 + $0x50] ss:$8 sps:$4 sm:$0xff]   ;;  %v1594_v6 = vld [vmem:[#allocation5 + $0x44] ss:$8 sps:$4 sm:$0xff]   ;;  %v1596_v7 = vld [vmem:[#allocation5 + $0x40] ss:$8 sps:$4 sm:$0xff]  }
  0x4b   : > { %797 = vmatprep.subr.bf16.mxu0 %v1588_v2  ;;  %1493 = vmatprep.subr.bf16.mxu1 %v1588_v2  ;;  %v1597_v8 = vld [vmem:[#allocation5 + $0x34] ss:$8 sps:$4 sm:$0xff]   ;;  %v1599_v9 = vld [vmem:[#allocation5 + $0x30] ss:$8 sps:$4 sm:$0xff]   ;;  %v1600_v10 = vld [vmem:[#allocation5 + $0x24] ss:$8 sps:$4 sm:$0xff]  }
  0x4c   : > { %v1602_v11 = vld [vmem:[#allocation5 + $0x20] ss:$8 sps:$4 sm:$0xff]   ;;  %v1603_v12 = vld [vmem:[#allocation5 + $0x14] ss:$8 sps:$4 sm:$0xff]   ;;  %v1635_v13 = vld [vmem:[%s2006_s4 + $0x4] ss:$8 sps:$4 sm:$0xff]  }
  0x4d   : > { %v1605_v14 = vld [vmem:[#allocation5 + $0x10] ss:$8 sps:$4 sm:$0xff]   ;;  %v1638_v15 = vld [vmem:[%s2006_s4 + $0x104] ss:$8 sps:$4 sm:$0xff]   ;;  %827 = vmatprep.mubr.bf16.mxu0 %v1635_v13  ;;  %v1608_v17 = vld [vmem:[#allocation5] ss:$8 sps:$4 sm:$0xff]  }
  0x4e   : > { %798 = vmatpush1.bf16.msra.mxu0 %v1590_v3  ;;  %1509 = vmatpush1.bf16.msra.mxu1 %v1590_v3  ;;  %v1606_v16 = vld [vmem:[#allocation5 + $0x4] ss:$8 sps:$4 sm:$0xff]   ;;  %v1609_v18 = vld [vmem:[#allocation5 + $0xf4] ss:$8 sps:$4 sm:$0xff]   ;;  %v1611_v19 = vld [vmem:[#allocation5 + $0xf0] ss:$8 sps:$4 sm:$0xff]  }
  0x4f   : > { %799 = vmatprep.subr.bf16.mxu0 %v1591_v4  ;;  %1494 = vmatprep.subr.bf16.mxu1 %v1591_v4  ;;  %v1612_v20 = vld [vmem:[#allocation5 + $0xe4] ss:$8 sps:$4 sm:$0xff]   ;;  %v1614_v21 = vld [vmem:[#allocation5 + $0xe0] ss:$8 sps:$4 sm:$0xff]   ;;  %v1615_v22 = vld [vmem:[#allocation5 + $0xd4] ss:$8 sps:$4 sm:$0xff]  }
  0x50   : > { %987 = vmatprep.mubr.bf16.mxu1 %v1638_v15  ;;  %v1617_v23 = vld [vmem:[#allocation5 + $0xd0] ss:$8 sps:$4 sm:$0xff]   ;;  %v1618_v24 = vld [vmem:[#allocation5 + $0xc4] ss:$8 sps:$4 sm:$0xff]   ;;  %v1620_v25 = vld [vmem:[#allocation5 + $0xc0] ss:$8 sps:$4 sm:$0xff]  }
  0x51   : > { %v1621_v26 = vld [vmem:[#allocation5 + $0xb4] ss:$8 sps:$4 sm:$0xff]   ;;  %v1623_v27 = vld [vmem:[#allocation5 + $0xb0] ss:$8 sps:$4 sm:$0xff]   ;;  %v1624_v28 = vld [vmem:[#allocation5 + $0xa4] ss:$8 sps:$4 sm:$0xff]  }
  0x52   : > { %800 = vmatpush1.bf16.msra.mxu0 %v1593_v5  ;;  %1510 = vmatpush1.bf16.msra.mxu1 %v1593_v5  ;;  %v1626_v29 = vld [vmem:[#allocation5 + $0xa0] ss:$8 sps:$4 sm:$0xff]   ;;  %v1627_v30 = vld [vmem:[#allocation5 + $0x94] ss:$8 sps:$4 sm:$0xff]   ;;  %v1629_v31 = vld [vmem:[#allocation5 + $0x90] ss:$8 sps:$4 sm:$0xff]  }
  0x53   : > { %801 = vmatprep.subr.bf16.mxu0 %v1594_v6  ;;  %1495 = vmatprep.subr.bf16.mxu1 %v1594_v6  ;;  %v1630_v32 = vld [vmem:[#allocation5 + $0x84] ss:$8 sps:$4 sm:$0xff]   ;;  %v1632_v33 = vld [vmem:[#allocation5 + $0x80] ss:$8 sps:$4 sm:$0xff]   ;;  %v1639_v36 = vld [vmem:[%s2006_s4 + $0x14] ss:$8 sps:$4 sm:$0xff]  }
  0x54   : > { %v1633_v34 = vld [vmem:[%s2006_s4] ss:$8 sps:$4 sm:$0xff]   ;;  %v1641_v37 = vld [vmem:[%s2006_s4 + $0x114] ss:$8 sps:$4 sm:$0xff]   ;;  %v1643_v38 = vld [vmem:[%s2006_s4 + $0x10] ss:$8 sps:$4 sm:$0xff]  }
  0x55   : > { %v1636_v35 = vld [vmem:[%s2006_s4 + $0x100] ss:$8 sps:$4 sm:$0xff]   ;;  %v1644_v39 = vld [vmem:[%s2006_s4 + $0x110] ss:$8 sps:$4 sm:$0xff]   ;;  %v1645_v40 = vld [vmem:[%s2006_s4 + $0x24] ss:$8 sps:$4 sm:$0xff]  }
  0x56   : > { %802 = vmatpush1.bf16.msra.mxu0 %v1596_v7  ;;  %1511 = vmatpush1.bf16.msra.mxu1 %v1596_v7  ;;  %v1647_v41 = vld [vmem:[%s2006_s4 + $0x124] ss:$8 sps:$4 sm:$0xff]   ;;  %v1649_v42 = vld [vmem:[%s2006_s4 + $0x20] ss:$8 sps:$4 sm:$0xff]   ;;  %v1651_v44 = vld [vmem:[%s2006_s4 + $0x34] ss:$8 sps:$4 sm:$0xff]  }
  0x57   : > { %803 = vmatprep.subr.bf16.mxu0 %v1597_v8  ;;  %1496 = vmatprep.subr.bf16.mxu1 %v1597_v8  ;;  %v1650_v43 = vld [vmem:[%s2006_s4 + $0x120] ss:$8 sps:$4 sm:$0xff]   ;;  %v1653_v45 = vld [vmem:[%s2006_s4 + $0x134] ss:$8 sps:$4 sm:$0xff]   ;;  %v1655_v46 = vld [vmem:[%s2006_s4 + $0x30] ss:$8 sps:$4 sm:$0xff]  }
  0x58   : > { %v1656_v47 = vld [vmem:[%s2006_s4 + $0x130] ss:$8 sps:$4 sm:$0xff]   ;;  %v1657_v48 = vld [vmem:[%s2006_s4 + $0x44] ss:$8 sps:$4 sm:$0xff]   ;;  %v1661_v50 = vld [vmem:[%s2006_s4 + $0x40] ss:$8 sps:$4 sm:$0xff]  }
  0x59   : > { %v1659_v49 = vld [vmem:[%s2006_s4 + $0x144] ss:$8 sps:$4 sm:$0xff]   ;;  %v1662_v51 = vld [vmem:[%s2006_s4 + $0x140] ss:$8 sps:$4 sm:$0xff]   ;;  %v1663_v52 = vld [vmem:[%s2006_s4 + $0x54] ss:$8 sps:$4 sm:$0xff]  }
  0x5a   : > { %804 = vmatpush1.bf16.msra.mxu0 %v1599_v9  ;;  %1512 = vmatpush1.bf16.msra.mxu1 %v1599_v9  ;;  %v1665_v53 = vld [vmem:[%s2006_s4 + $0x154] ss:$8 sps:$4 sm:$0xff]   ;;  %v1667_v54 = vld [vmem:[%s2006_s4 + $0x50] ss:$8 sps:$4 sm:$0xff]   ;;  %v1669_v56 = vld [vmem:[%s2006_s4 + $0x64] ss:$8 sps:$4 sm:$0xff]  }
  0x5b   : > { %805 = vmatprep.subr.bf16.mxu0 %v1600_v10  ;;  %1497 = vmatprep.subr.bf16.mxu1 %v1600_v10  ;;  %v1668_v55 = vld [vmem:[%s2006_s4 + $0x150] ss:$8 sps:$4 sm:$0xff]   ;;  %v1671_v57 = vld [vmem:[%s2006_s4 + $0x164] ss:$8 sps:$4 sm:$0xff]   ;;  %v1673_v58 = vld [vmem:[%s2006_s4 + $0x60] ss:$8 sps:$4 sm:$0xff]  }
  0x5c   : > { %v1674_v59 = vld [vmem:[%s2006_s4 + $0x160] ss:$8 sps:$4 sm:$0xff]   ;;  %v1675_v60 = vld [vmem:[%s2006_s4 + $0x74] ss:$8 sps:$4 sm:$0xff]   ;;  %v1679_v62 = vld [vmem:[%s2006_s4 + $0x70] ss:$8 sps:$4 sm:$0xff]  }
  0x5d   : > { %v1677_v61 = vld [vmem:[%s2006_s4 + $0x174] ss:$8 sps:$4 sm:$0xff]   ;;  %v1680_v63 = vld [vmem:[%s2006_s4 + $0x170] ss:$8 sps:$4 sm:$0xff]   ;;  %v1681_v0 = vld [vmem:[%s2006_s4 + $0x84] ss:$8 sps:$4 sm:$0xff]  }
  0x5e   : > { %806 = vmatpush1.bf16.msra.mxu0 %v1602_v11  ;;  %1513 = vmatpush1.bf16.msra.mxu1 %v1602_v11  ;;  %v1683_v1 = vld [vmem:[%s2006_s4 + $0x184] ss:$8 sps:$4 sm:$0xff]   ;;  %v1685_v2 = vld [vmem:[%s2006_s4 + $0x80] ss:$8 sps:$4 sm:$0xff]   ;;  %v1687_v4 = vld [vmem:[%s2006_s4 + $0x94] ss:$8 sps:$4 sm:$0xff]  }
  0x5f   : > { %807 = vmatprep.subr.bf16.mxu0 %v1603_v12  ;;  %1498 = vmatprep.subr.bf16.mxu1 %v1603_v12  ;;  %v1686_v3 = vld [vmem:[%s2006_s4 + $0x180] ss:$8 sps:$4 sm:$0xff]   ;;  %v1689_v5 = vld [vmem:[%s2006_s4 + $0x194] ss:$8 sps:$4 sm:$0xff]   ;;  %v1691_v6 = vld [vmem:[%s2006_s4 + $0x90] ss:$8 sps:$4 sm:$0xff]  }
  0x60   : > { %v1692_v7 = vld [vmem:[%s2006_s4 + $0x190] ss:$8 sps:$4 sm:$0xff]   ;;  %v1693_v8 = vld [vmem:[%s2006_s4 + $0xa4] ss:$8 sps:$4 sm:$0xff]   ;;  %v1697_v10 = vld [vmem:[%s2006_s4 + $0xa0] ss:$8 sps:$4 sm:$0xff]  }
  0x61   : > { %v1695_v9 = vld [vmem:[%s2006_s4 + $0x1a4] ss:$8 sps:$4 sm:$0xff]   ;;  %v1698_v11 = vld [vmem:[%s2006_s4 + $0x1a0] ss:$8 sps:$4 sm:$0xff]   ;;  %v1699_v12 = vld [vmem:[%s2006_s4 + $0xb4] ss:$8 sps:$4 sm:$0xff]  }
  0x62   : > { %808 = vmatpush1.bf16.msra.mxu0 %v1605_v14  ;;  %1514 = vmatpush1.bf16.msra.mxu1 %v1605_v14  ;;  %v1701_v13 = vld [vmem:[%s2006_s4 + $0x1b4] ss:$8 sps:$4 sm:$0xff]   ;;  %v1703_v14 = vld [vmem:[%s2006_s4 + $0xb0] ss:$8 sps:$4 sm:$0xff]   ;;  %s1385_s28 = sshll.u32 %s2002_s26, 10  ;;  %s1491_s17 = sshll.u32 %s1901_s16, 14 }
  0x63   : > { %809 = vmatprep.subr.bf16.mxu0 %v1606_v16  ;;  %1499 = vmatprep.subr.bf16.mxu1 %v1606_v16  ;;  %v1704_v15 = vld [vmem:[%s2006_s4 + $0x1b0] ss:$8 sps:$4 sm:$0xff]   ;;  %v1705_v16 = vld [vmem:[%s2006_s4 + $0xc4] ss:$8 sps:$4 sm:$0xff]   ;;  %s2090_s29 = scalar_lea.vmem [#allocation7], %s1385_s28  ;;  %s2345_s8 = scalar_lea.hbm %s2399_s3, %s1491_s17 }
  0x64   : > { %s1291_s22 = sshll.u32 %s2090_s29, 4  ;;  %s1277_s16 = scalar_lea.sflag [#allocation4], %s2002_s26  ;;  %s2347_s22 = int_to_ptr.vmem [resolvable:$true] %s1291_s22 }
  0x65   : > { %s1783_s9 = scalar_lea.vmem %s2347_s22, 16384  ;;  %p2415_p11 = scmp.ne.s32.totalorder %s2409_s6, 0 }
  0x66   : > { %810 = vmatpush1.bf16.msra.mxu0 %v1608_v17  ;;  %1515 = vmatpush1.bf16.msra.mxu1 %v1608_v17  ;;  %v1707_v17 = vld [vmem:[%s2006_s4 + $0x1c4] ss:$8 sps:$4 sm:$0xff]   ;;  %p1784_p3 = scmp.ne.s32.totalorder %s2347_s22, %s1783_s9  ;;  %s1857_s7 = smov [#allocation7]  }
  0x67   : > { %811 = vmatprep.subr.bf16.mxu0 %v1609_v18  ;;  %1500 = vmatprep.subr.bf16.mxu1 %v1609_v18  ;;  %v1709_v18 = vld [vmem:[%s2006_s4 + $0xc0] ss:$8 sps:$4 sm:$0xff]   ;;  %s1787_s10 = sshll.u32 %s1857_s7, 4  ;;  %s1788_s10 = int_to_ptr.vmem [resolvable:$false] %s1787_s10 }
  0x68   : > { %p1785_p7 = pnand %p1784_p3, %p2415_p11  ;;  %s1789_s11 = scalar_lea.vmem %s1788_s10, 32768 }
  0x69   : > { %p1790_p10 = scmp.lt.s32.totalorder %s2347_s22, %s1788_s10  ;;  %p1791_p12 = scmp.lt.s32.totalorder %s1789_s11, %s1783_s9 }
  0x6a   : > { %812 = vmatpush2.bf16.msra.mxu0 %v1611_v19  ;;  %1516 = vmatpush2.bf16.msra.mxu1 %v1611_v19  ;;  %v1710_v19 = vld [vmem:[%s2006_s4 + $0x1c0] ss:$8 sps:$4 sm:$0xff]   ;;  %p1786_p9 = pneg %p1785_p7 }
  0x6b   : > { %813 = vmatprep.subr.bf16.mxu0 %v1612_v20  ;;  %1501 = vmatprep.subr.bf16.mxu1 %v1612_v20  ;;  %v1711_v20 = vld [vmem:[%s2006_s4 + $0xd4] ss:$8 sps:$4 sm:$0xff]   ;;  %p1792_p13 = por %p1791_p12, %p1790_p10 }
  0x6d   : > { %p1793_p0 = pnand %p1792_p13, %p1786_p9 }
  0x6e   : > { %814 = vmatpush2.bf16.msra.mxu0 %v1614_v21  ;;  %1517 = vmatpush2.bf16.msra.mxu1 %v1614_v21  ;;  %v1713_v21 = vld [vmem:[%s2006_s4 + $0x1d4] ss:$8 sps:$4 sm:$0xff]  }
  0x6f   : > { %815 = vmatprep.subr.bf16.mxu0 %v1615_v22  ;;  %1502 = vmatprep.subr.bf16.mxu1 %v1615_v22  ;;  %v1715_v22 = vld [vmem:[%s2006_s4 + $0xd0] ss:$8 sps:$4 sm:$0xff]  }
  0x72   : > { %816 = vmatpush2.bf16.msra.mxu0 %v1617_v23  ;;  %1518 = vmatpush2.bf16.msra.mxu1 %v1617_v23  ;;  %v1716_v23 = vld [vmem:[%s2006_s4 + $0x1d0] ss:$8 sps:$4 sm:$0xff]  }
  0x73   : > { %817 = vmatprep.subr.bf16.mxu0 %v1618_v24  ;;  %1503 = vmatprep.subr.bf16.mxu1 %v1618_v24  ;;  %v1717_v24 = vld [vmem:[%s2006_s4 + $0xe4] ss:$8 sps:$4 sm:$0xff]  }
  0x76   : > { %818 = vmatpush2.bf16.msra.mxu0 %v1620_v25  ;;  %1519 = vmatpush2.bf16.msra.mxu1 %v1620_v25  ;;  %v1719_v25 = vld [vmem:[%s2006_s4 + $0x1e4] ss:$8 sps:$4 sm:$0xff]  }
  0x77   : > { %819 = vmatprep.subr.bf16.mxu0 %v1621_v26  ;;  %1504 = vmatprep.subr.bf16.mxu1 %v1621_v26  ;;  %v1721_v26 = vld [vmem:[%s2006_s4 + $0xe0] ss:$8 sps:$4 sm:$0xff]  }
  0x7a   : > { %820 = vmatpush2.bf16.msra.mxu0 %v1623_v27  ;;  %1520 = vmatpush2.bf16.msra.mxu1 %v1623_v27  ;;  %v1722_v27 = vld [vmem:[%s2006_s4 + $0x1e0] ss:$8 sps:$4 sm:$0xff]  }
  0x7b   : > { %821 = vmatprep.subr.bf16.mxu0 %v1624_v28  ;;  %1505 = vmatprep.subr.bf16.mxu1 %v1624_v28  ;;  %v1723_v28 = vld [vmem:[%s2006_s4 + $0xf4] ss:$8 sps:$4 sm:$0xff]  }
  0x7e   : > { %822 = vmatpush2.bf16.msra.mxu0 %v1626_v29  ;;  %1521 = vmatpush2.bf16.msra.mxu1 %v1626_v29  ;;  %v1725_v29 = vld [vmem:[%s2006_s4 + $0x1f4] ss:$8 sps:$4 sm:$0xff]  }
  0x7f   : > { %823 = vmatprep.subr.bf16.mxu0 %v1627_v30  ;;  %1506 = vmatprep.subr.bf16.mxu1 %v1627_v30  ;;  %v1727_v30 = vld [vmem:[%s2006_s4 + $0xf0] ss:$8 sps:$4 sm:$0xff]  }
  0x82   : > { %824 = vmatpush2.bf16.msra.mxu0 %v1629_v31  ;;  %1522 = vmatpush2.bf16.msra.mxu1 %v1629_v31  ;;  %v1728_v31 = vld [vmem:[%s2006_s4 + $0x1f0] ss:$8 sps:$4 sm:$0xff]  }
  0x83   : > { %825 = vmatprep.subr.bf16.mxu0 %v1630_v32  ;;  %1507 = vmatprep.subr.bf16.mxu1 %v1630_v32  ;;  %v305_v32 = vlaneseq }
  0x86   : > { %826 = vmatpush2.bf16.msra.mxu0 %v1632_v33  ;;  %1523 = vmatpush2.bf16.msra.mxu1 %v1632_v33  ;;  %v306_v33 = vshrl.u32 %v305_v32, 7 }
  0x89   : > { %828 = vmatmul.mubr.bf16.vlgmr.msra.gmra.mxu0 %v1633_v34  ;;  %988 = vmatmul.mubr.bf16.vlgmr.msra.gmra.mxu1 %v1636_v35  ;;  %v307_v34 = vsub.s32 0, %v306_v33  ;;  %v303_v35 = vld [vmem:[%s2398_s2] sm:$0x3] }
  0x8a   : > { %837 = vmatprep.mubr.bf16.mxu0 %v1639_v36  ;;  %997 = vmatprep.mubr.bf16.mxu1 %v1641_v37  ;;  %v311_v36 = vsub.s32 1, %v306_v33 }
  0x8b   : > { %v2084_v37 = vrot.slane %v303_v35, %v307_v34 }
  0x91   : > { %838 = vmatmul.mubr.bf16.gmra.mxu0 %v1643_v38  ;;  %998 = vmatmul.mubr.bf16.gmra.mxu1 %v1644_v39  ;;  %v2086_v38 = vrot.slane %v303_v35, %v311_v36 }
  0x92   : > { %847 = vmatprep.mubr.bf16.mxu0 %v1645_v40  ;;  %1007 = vmatprep.mubr.bf16.mxu1 %v1647_v41 }
  0x99   : > { %848 = vmatmul.mubr.bf16.gmra.mxu0 %v1649_v42  ;;  %1008 = vmatmul.mubr.bf16.gmra.mxu1 %v1650_v43 }
  0x9a   : > { %857 = vmatprep.mubr.bf16.mxu0 %v1651_v44  ;;  %1017 = vmatprep.mubr.bf16.mxu1 %v1653_v45 }
  0xa1   : > { %858 = vmatmul.mubr.bf16.gmra.mxu0 %v1655_v46  ;;  %1018 = vmatmul.mubr.bf16.gmra.mxu1 %v1656_v47 }
  0xa2   : > { %867 = vmatprep.mubr.bf16.mxu0 %v1657_v48  ;;  %1027 = vmatprep.mubr.bf16.mxu1 %v1659_v49 }
  0xa9   : > { %868 = vmatmul.mubr.bf16.gmra.mxu0 %v1661_v50  ;;  %1028 = vmatmul.mubr.bf16.gmra.mxu1 %v1662_v51 }
  0xaa   : > { %877 = vmatprep.mubr.bf16.mxu0 %v1663_v52  ;;  %1037 = vmatprep.mubr.bf16.mxu1 %v1665_v53 }
  0xb1   : > { %878 = vmatmul.mubr.bf16.gmra.mxu0 %v1667_v54  ;;  %1038 = vmatmul.mubr.bf16.gmra.mxu1 %v1668_v55 }
  0xb2   : > { %887 = vmatprep.mubr.bf16.mxu0 %v1669_v56  ;;  %1047 = vmatprep.mubr.bf16.mxu1 %v1671_v57 }
  0xb9   : > { %888 = vmatmul.mubr.bf16.gmra.mxu0 %v1673_v58  ;;  %1048 = vmatmul.mubr.bf16.gmra.mxu1 %v1674_v59 }
  0xba   : > { %897 = vmatprep.mubr.bf16.mxu0 %v1675_v60  ;;  %1057 = vmatprep.mubr.bf16.mxu1 %v1677_v61 }
  0xc1   : > { %898 = vmatmul.mubr.bf16.gmra.mxu0 %v1679_v62  ;;  %1058 = vmatmul.mubr.bf16.gmra.mxu1 %v1680_v63 }
  0xc2   : > { %907 = vmatprep.mubr.bf16.mxu0 %v1681_v0  ;;  %1067 = vmatprep.mubr.bf16.mxu1 %v1683_v1 }
  0xc9   : > { %908 = vmatmul.mubr.bf16.gmra.mxu0 %v1685_v2  ;;  %1068 = vmatmul.mubr.bf16.gmra.mxu1 %v1686_v3 }
  0xca   : > { %917 = vmatprep.mubr.bf16.mxu0 %v1687_v4  ;;  %1077 = vmatprep.mubr.bf16.mxu1 %v1689_v5 }
  0xd1   : > { %918 = vmatmul.mubr.bf16.gmra.mxu0 %v1691_v6  ;;  %1078 = vmatmul.mubr.bf16.gmra.mxu1 %v1692_v7 }
  0xd2   : > { %927 = vmatprep.mubr.bf16.mxu0 %v1693_v8  ;;  %1087 = vmatprep.mubr.bf16.mxu1 %v1695_v9 }
  0xd9   : > { %928 = vmatmul.mubr.bf16.gmra.mxu0 %v1697_v10  ;;  %1088 = vmatmul.mubr.bf16.gmra.mxu1 %v1698_v11 }
  0xda   : > { %937 = vmatprep.mubr.bf16.mxu0 %v1699_v12  ;;  %1097 = vmatprep.mubr.bf16.mxu1 %v1701_v13 }
  0xe1   : > { %938 = vmatmul.mubr.bf16.gmra.mxu0 %v1703_v14  ;;  %1098 = vmatmul.mubr.bf16.gmra.mxu1 %v1704_v15 }
  0xe2   : > { %947 = vmatprep.mubr.bf16.mxu0 %v1705_v16  ;;  %1107 = vmatprep.mubr.bf16.mxu1 %v1707_v17 }
  0xe9   : > { %948 = vmatmul.mubr.bf16.gmra.mxu0 %v1709_v18  ;;  %1108 = vmatmul.mubr.bf16.gmra.mxu1 %v1710_v19 }
  0xea   : > { %957 = vmatprep.mubr.bf16.mxu0 %v1711_v20  ;;  %1117 = vmatprep.mubr.bf16.mxu1 %v1713_v21 }
  0xf1   : > { %958 = vmatmul.mubr.bf16.gmra.mxu0 %v1715_v22  ;;  %1118 = vmatmul.mubr.bf16.gmra.mxu1 %v1716_v23 }
  0xf2   : > { %967 = vmatprep.mubr.bf16.mxu0 %v1717_v24  ;;  %1127 = vmatprep.mubr.bf16.mxu1 %v1719_v25 }
  0xf9   : > { %968 = vmatmul.mubr.bf16.gmra.mxu0 %v1721_v26  ;;  %1128 = vmatmul.mubr.bf16.gmra.mxu1 %v1722_v27 }
  0xfa   : > { %977 = vmatprep.mubr.bf16.mxu0 %v1723_v28  ;;  %1137 = vmatprep.mubr.bf16.mxu1 %v1725_v29 }
 0x101   : > { %978 = vmatmul.mubr.bf16.gmra.mxu0 %v1727_v30  ;;  %1138 = vmatmul.mubr.bf16.gmra.mxu1 %v1728_v31 }
 0x149   : > { %v829_v39 = vpop.f32.mrf.mxu0  ;;  %v989_v40 = vpop.f32.mrf.mxu1 }
 0x14a   : > { %v830_v41 = vadd.f32 %v829_v39, %v2084_v37  ;;  %v990_v42 = vadd.f32 %v989_v40, %v2084_v37 }
 0x14b   : > { %v831_v43 = vpop.f32.mrf.mxu0  ;;  %v991_v44 = vpop.f32.mrf.mxu1 }
 0x14c   : > { %1148 = vst [vmem:[%s2090_s29] sm:$0xff] %v830_v41  ;;  %1212 = vst [vmem:[%s2090_s29 + $0x200] sm:$0xff] %v990_v42  ;;  %v832_v45 = vadd.f32 %v831_v43, %v2086_v38  ;;  %v992_v46 = vadd.f32 %v991_v44, %v2086_v38 }
 0x14d   : > { %v833_v47 = vpop.f32.mrf.mxu0  ;;  %v993_v48 = vpop.f32.mrf.mxu1 }
 0x14e   : > { %1149 = vst [vmem:[%s2090_s29 + $0x8] sm:$0xff] %v832_v45  ;;  %1213 = vst [vmem:[%s2090_s29 + $0x208] sm:$0xff] %v992_v46  ;;  %v834_v49 = vadd.f32 %v833_v47, %v2084_v37  ;;  %v994_v50 = vadd.f32 %v993_v48, %v2084_v37 }
 0x14f   : > { %v835_v51 = vpop.f32.mrf.mxu0  ;;  %v995_v52 = vpop.f32.mrf.mxu1 }
 0x150   : > { %1150 = vst [vmem:[%s2090_s29 + $0x10] sm:$0xff] %v834_v49  ;;  %1214 = vst [vmem:[%s2090_s29 + $0x210] sm:$0xff] %v994_v50  ;;  %v836_v53 = vadd.f32 %v835_v51, %v2086_v38  ;;  %v996_v54 = vadd.f32 %v995_v52, %v2086_v38 }
 0x151   : > { %v839_v55 = vpop.f32.mrf.mxu0  ;;  %v999_v56 = vpop.f32.mrf.mxu1 }
 0x152   : > { %1151 = vst [vmem:[%s2090_s29 + $0x18] sm:$0xff] %v836_v53  ;;  %1215 = vst [vmem:[%s2090_s29 + $0x218] sm:$0xff] %v996_v54  ;;  %v840_v57 = vadd.f32 %v839_v55, %v2084_v37  ;;  %v1000_v58 = vadd.f32 %v999_v56, %v2084_v37 }
 0x153   : > { %v841_v59 = vpop.f32.mrf.mxu0  ;;  %v1001_v60 = vpop.f32.mrf.mxu1 }
 0x154   : > { %1152 = vst [vmem:[%s2090_s29 + $0x20] sm:$0xff] %v840_v57  ;;  %1216 = vst [vmem:[%s2090_s29 + $0x220] sm:$0xff] %v1000_v58  ;;  %v842_v61 = vadd.f32 %v841_v59, %v2086_v38  ;;  %v1002_v62 = vadd.f32 %v1001_v60, %v2086_v38 }
 0x155   : > { %v843_v63 = vpop.f32.mrf.mxu0  ;;  %v1003_v0 = vpop.f32.mrf.mxu1 }
 0x156   : > { %1153 = vst [vmem:[%s2090_s29 + $0x28] sm:$0xff] %v842_v61  ;;  %1217 = vst [vmem:[%s2090_s29 + $0x228] sm:$0xff] %v1002_v62  ;;  %v844_v1 = vadd.f32 %v843_v63, %v2084_v37  ;;  %v1004_v2 = vadd.f32 %v1003_v0, %v2084_v37 }
 0x157   : > { %v845_v3 = vpop.f32.mrf.mxu0  ;;  %v1005_v4 = vpop.f32.mrf.mxu1 }
 0x158   : > { %1154 = vst [vmem:[%s2090_s29 + $0x30] sm:$0xff] %v844_v1  ;;  %1218 = vst [vmem:[%s2090_s29 + $0x230] sm:$0xff] %v1004_v2  ;;  %v846_v5 = vadd.f32 %v845_v3, %v2086_v38  ;;  %v1006_v6 = vadd.f32 %v1005_v4, %v2086_v38 }
 0x159   : > { %v849_v7 = vpop.f32.mrf.mxu0  ;;  %v1009_v8 = vpop.f32.mrf.mxu1 }
 0x15a   : > { %1155 = vst [vmem:[%s2090_s29 + $0x38] sm:$0xff] %v846_v5  ;;  %1219 = vst [vmem:[%s2090_s29 + $0x238] sm:$0xff] %v1006_v6  ;;  %v850_v9 = vadd.f32 %v849_v7, %v2084_v37  ;;  %v1010_v10 = vadd.f32 %v1009_v8, %v2084_v37 }
 0x15b   : > { %v851_v11 = vpop.f32.mrf.mxu0  ;;  %v1011_v12 = vpop.f32.mrf.mxu1 }
 0x15c   : > { %1156 = vst [vmem:[%s2090_s29 + $0x40] sm:$0xff] %v850_v9  ;;  %1220 = vst [vmem:[%s2090_s29 + $0x240] sm:$0xff] %v1010_v10  ;;  %v852_v13 = vadd.f32 %v851_v11, %v2086_v38  ;;  %v1012_v14 = vadd.f32 %v1011_v12, %v2086_v38 }
 0x15d   : > { %v853_v15 = vpop.f32.mrf.mxu0  ;;  %v1013_v16 = vpop.f32.mrf.mxu1 }
 0x15e   : > { %1157 = vst [vmem:[%s2090_s29 + $0x48] sm:$0xff] %v852_v13  ;;  %1221 = vst [vmem:[%s2090_s29 + $0x248] sm:$0xff] %v1012_v14  ;;  %v854_v17 = vadd.f32 %v853_v15, %v2084_v37  ;;  %v1014_v18 = vadd.f32 %v1013_v16, %v2084_v37 }
 0x15f   : > { %v855_v19 = vpop.f32.mrf.mxu0  ;;  %v1015_v20 = vpop.f32.mrf.mxu1 }
 0x160   : > { %1158 = vst [vmem:[%s2090_s29 + $0x50] sm:$0xff] %v854_v17  ;;  %1222 = vst [vmem:[%s2090_s29 + $0x250] sm:$0xff] %v1014_v18  ;;  %v856_v21 = vadd.f32 %v855_v19, %v2086_v38  ;;  %v1016_v22 = vadd.f32 %v1015_v20, %v2086_v38 }
 0x161   : > { %v859_v23 = vpop.f32.mrf.mxu0  ;;  %v1019_v24 = vpop.f32.mrf.mxu1 }
 0x162   : > { %1159 = vst [vmem:[%s2090_s29 + $0x58] sm:$0xff] %v856_v21  ;;  %1223 = vst [vmem:[%s2090_s29 + $0x258] sm:$0xff] %v1016_v22  ;;  %v860_v25 = vadd.f32 %v859_v23, %v2084_v37  ;;  %v1020_v26 = vadd.f32 %v1019_v24, %v2084_v37 }
 0x163   : > { %v861_v27 = vpop.f32.mrf.mxu0  ;;  %v1021_v28 = vpop.f32.mrf.mxu1 }
 0x164   : > { %1160 = vst [vmem:[%s2090_s29 + $0x60] sm:$0xff] %v860_v25  ;;  %1224 = vst [vmem:[%s2090_s29 + $0x260] sm:$0xff] %v1020_v26  ;;  %v862_v29 = vadd.f32 %v861_v27, %v2086_v38  ;;  %v1022_v30 = vadd.f32 %v1021_v28, %v2086_v38 }
 0x165   : > { %v863_v31 = vpop.f32.mrf.mxu0  ;;  %v1023_v32 = vpop.f32.mrf.mxu1 }
 0x166   : > { %1161 = vst [vmem:[%s2090_s29 + $0x68] sm:$0xff] %v862_v29  ;;  %1225 = vst [vmem:[%s2090_s29 + $0x268] sm:$0xff] %v1022_v30  ;;  %v864_v33 = vadd.f32 %v863_v31, %v2084_v37  ;;  %v1024_v34 = vadd.f32 %v1023_v32, %v2084_v37 }
 0x167   : > { %v865_v35 = vpop.f32.mrf.mxu0  ;;  %v1025_v36 = vpop.f32.mrf.mxu1 }
 0x168   : > { %1162 = vst [vmem:[%s2090_s29 + $0x70] sm:$0xff] %v864_v33  ;;  %1226 = vst [vmem:[%s2090_s29 + $0x270] sm:$0xff] %v1024_v34  ;;  %v866_v39 = vadd.f32 %v865_v35, %v2086_v38  ;;  %v1026_v40 = vadd.f32 %v1025_v36, %v2086_v38 }
 0x169   : > { %v869_v41 = vpop.f32.mrf.mxu0  ;;  %v1029_v42 = vpop.f32.mrf.mxu1 }
 0x16a   : > { %1163 = vst [vmem:[%s2090_s29 + $0x78] sm:$0xff] %v866_v39  ;;  %1227 = vst [vmem:[%s2090_s29 + $0x278] sm:$0xff] %v1026_v40  ;;  %v870_v43 = vadd.f32 %v869_v41, %v2084_v37  ;;  %v1030_v44 = vadd.f32 %v1029_v42, %v2084_v37 }
 0x16b   : > { %v871_v45 = vpop.f32.mrf.mxu0  ;;  %v1031_v46 = vpop.f32.mrf.mxu1 }
 0x16c   : > { %1164 = vst [vmem:[%s2090_s29 + $0x80] sm:$0xff] %v870_v43  ;;  %1228 = vst [vmem:[%s2090_s29 + $0x280] sm:$0xff] %v1030_v44  ;;  %v872_v47 = vadd.f32 %v871_v45, %v2086_v38  ;;  %v1032_v48 = vadd.f32 %v1031_v46, %v2086_v38 }
 0x16d   : > { %v873_v49 = vpop.f32.mrf.mxu0  ;;  %v1033_v50 = vpop.f32.mrf.mxu1 }
 0x16e   : > { %1165 = vst [vmem:[%s2090_s29 + $0x88] sm:$0xff] %v872_v47  ;;  %1229 = vst [vmem:[%s2090_s29 + $0x288] sm:$0xff] %v1032_v48  ;;  %v874_v51 = vadd.f32 %v873_v49, %v2084_v37  ;;  %v1034_v52 = vadd.f32 %v1033_v50, %v2084_v37 }
 0x16f   : > { %v875_v53 = vpop.f32.mrf.mxu0  ;;  %v1035_v54 = vpop.f32.mrf.mxu1 }
 0x170   : > { %1166 = vst [vmem:[%s2090_s29 + $0x90] sm:$0xff] %v874_v51  ;;  %1230 = vst [vmem:[%s2090_s29 + $0x290] sm:$0xff] %v1034_v52  ;;  %v876_v55 = vadd.f32 %v875_v53, %v2086_v38  ;;  %v1036_v56 = vadd.f32 %v1035_v54, %v2086_v38 }
 0x171   : > { %v879_v57 = vpop.f32.mrf.mxu0  ;;  %v1039_v58 = vpop.f32.mrf.mxu1 }
 0x172   : > { %1167 = vst [vmem:[%s2090_s29 + $0x98] sm:$0xff] %v876_v55  ;;  %1231 = vst [vmem:[%s2090_s29 + $0x298] sm:$0xff] %v1036_v56  ;;  %v880_v59 = vadd.f32 %v879_v57, %v2084_v37  ;;  %v1040_v60 = vadd.f32 %v1039_v58, %v2084_v37 }
 0x173   : > { %v881_v61 = vpop.f32.mrf.mxu0  ;;  %v1041_v62 = vpop.f32.mrf.mxu1 }
 0x174   : > { %1168 = vst [vmem:[%s2090_s29 + $0xa0] sm:$0xff] %v880_v59  ;;  %1232 = vst [vmem:[%s2090_s29 + $0x2a0] sm:$0xff] %v1040_v60  ;;  %v882_v63 = vadd.f32 %v881_v61, %v2086_v38  ;;  %v1042_v0 = vadd.f32 %v1041_v62, %v2086_v38 }
 0x175   : > { %v883_v1 = vpop.f32.mrf.mxu0  ;;  %v1043_v2 = vpop.f32.mrf.mxu1 }
 0x176   : > { %1169 = vst [vmem:[%s2090_s29 + $0xa8] sm:$0xff] %v882_v63  ;;  %1233 = vst [vmem:[%s2090_s29 + $0x2a8] sm:$0xff] %v1042_v0  ;;  %v884_v3 = vadd.f32 %v883_v1, %v2084_v37  ;;  %v1044_v4 = vadd.f32 %v1043_v2, %v2084_v37 }
 0x177   : > { %v885_v5 = vpop.f32.mrf.mxu0  ;;  %v1045_v6 = vpop.f32.mrf.mxu1 }
 0x178   : > { %1170 = vst [vmem:[%s2090_s29 + $0xb0] sm:$0xff] %v884_v3  ;;  %1234 = vst [vmem:[%s2090_s29 + $0x2b0] sm:$0xff] %v1044_v4  ;;  %v886_v7 = vadd.f32 %v885_v5, %v2086_v38  ;;  %v1046_v8 = vadd.f32 %v1045_v6, %v2086_v38 }
 0x179   : > { %v889_v9 = vpop.f32.mrf.mxu0  ;;  %v1049_v10 = vpop.f32.mrf.mxu1 }
 0x17a   : > { %1171 = vst [vmem:[%s2090_s29 + $0xb8] sm:$0xff] %v886_v7  ;;  %1235 = vst [vmem:[%s2090_s29 + $0x2b8] sm:$0xff] %v1046_v8  ;;  %v890_v11 = vadd.f32 %v889_v9, %v2084_v37  ;;  %v1050_v12 = vadd.f32 %v1049_v10, %v2084_v37 }
 0x17b   : > { %v891_v13 = vpop.f32.mrf.mxu0  ;;  %v1051_v14 = vpop.f32.mrf.mxu1 }
 0x17c   : > { %1172 = vst [vmem:[%s2090_s29 + $0xc0] sm:$0xff] %v890_v11  ;;  %1236 = vst [vmem:[%s2090_s29 + $0x2c0] sm:$0xff] %v1050_v12  ;;  %v892_v15 = vadd.f32 %v891_v13, %v2086_v38  ;;  %v1052_v16 = vadd.f32 %v1051_v14, %v2086_v38 }
 0x17d   : > { %v893_v17 = vpop.f32.mrf.mxu0  ;;  %v1053_v18 = vpop.f32.mrf.mxu1 }
 0x17e   : > { %1173 = vst [vmem:[%s2090_s29 + $0xc8] sm:$0xff] %v892_v15  ;;  %1237 = vst [vmem:[%s2090_s29 + $0x2c8] sm:$0xff] %v1052_v16  ;;  %v894_v19 = vadd.f32 %v893_v17, %v2084_v37  ;;  %v1054_v20 = vadd.f32 %v1053_v18, %v2084_v37 }
 0x17f   : > { %v895_v21 = vpop.f32.mrf.mxu0  ;;  %v1055_v22 = vpop.f32.mrf.mxu1 }
 0x180   : > { %1174 = vst [vmem:[%s2090_s29 + $0xd0] sm:$0xff] %v894_v19  ;;  %1238 = vst [vmem:[%s2090_s29 + $0x2d0] sm:$0xff] %v1054_v20  ;;  %v896_v23 = vadd.f32 %v895_v21, %v2086_v38  ;;  %v1056_v24 = vadd.f32 %v1055_v22, %v2086_v38 }
 0x181   : > { %v899_v25 = vpop.f32.mrf.mxu0  ;;  %v1059_v26 = vpop.f32.mrf.mxu1 }
 0x182   : > { %1175 = vst [vmem:[%s2090_s29 + $0xd8] sm:$0xff] %v896_v23  ;;  %1239 = vst [vmem:[%s2090_s29 + $0x2d8] sm:$0xff] %v1056_v24  ;;  %v900_v27 = vadd.f32 %v899_v25, %v2084_v37  ;;  %v1060_v28 = vadd.f32 %v1059_v26, %v2084_v37 }
 0x183   : > { %v901_v29 = vpop.f32.mrf.mxu0  ;;  %v1061_v30 = vpop.f32.mrf.mxu1 }
 0x184   : > { %1176 = vst [vmem:[%s2090_s29 + $0xe0] sm:$0xff] %v900_v27  ;;  %1240 = vst [vmem:[%s2090_s29 + $0x2e0] sm:$0xff] %v1060_v28  ;;  %v902_v31 = vadd.f32 %v901_v29, %v2086_v38  ;;  %v1062_v32 = vadd.f32 %v1061_v30, %v2086_v38 }
 0x185   : > { %v903_v33 = vpop.f32.mrf.mxu0  ;;  %v1063_v34 = vpop.f32.mrf.mxu1 }
 0x186   : > { %1177 = vst [vmem:[%s2090_s29 + $0xe8] sm:$0xff] %v902_v31  ;;  %1241 = vst [vmem:[%s2090_s29 + $0x2e8] sm:$0xff] %v1062_v32  ;;  %v904_v35 = vadd.f32 %v903_v33, %v2084_v37  ;;  %v1064_v36 = vadd.f32 %v1063_v34, %v2084_v37 }
 0x187   : > { %v905_v39 = vpop.f32.mrf.mxu0  ;;  %v1065_v40 = vpop.f32.mrf.mxu1 }
 0x188   : > { %1178 = vst [vmem:[%s2090_s29 + $0xf0] sm:$0xff] %v904_v35  ;;  %1242 = vst [vmem:[%s2090_s29 + $0x2f0] sm:$0xff] %v1064_v36  ;;  %v906_v41 = vadd.f32 %v905_v39, %v2086_v38  ;;  %v1066_v42 = vadd.f32 %v1065_v40, %v2086_v38 }
 0x189   : > { %v909_v43 = vpop.f32.mrf.mxu0  ;;  %v1069_v44 = vpop.f32.mrf.mxu1 }
 0x18a   : > { %1179 = vst [vmem:[%s2090_s29 + $0xf8] sm:$0xff] %v906_v41  ;;  %1243 = vst [vmem:[%s2090_s29 + $0x2f8] sm:$0xff] %v1066_v42  ;;  %v910_v45 = vadd.f32 %v909_v43, %v2084_v37  ;;  %v1070_v46 = vadd.f32 %v1069_v44, %v2084_v37 }
 0x18b   : > { %v911_v47 = vpop.f32.mrf.mxu0  ;;  %v1071_v48 = vpop.f32.mrf.mxu1 }
 0x18c   : > { %1180 = vst [vmem:[%s2090_s29 + $0x100] sm:$0xff] %v910_v45  ;;  %1244 = vst [vmem:[%s2090_s29 + $0x300] sm:$0xff] %v1070_v46  ;;  %v912_v49 = vadd.f32 %v911_v47, %v2086_v38  ;;  %v1072_v50 = vadd.f32 %v1071_v48, %v2086_v38 }
 0x18d   : > { %v913_v51 = vpop.f32.mrf.mxu0  ;;  %v1073_v52 = vpop.f32.mrf.mxu1 }
 0x18e   : > { %1181 = vst [vmem:[%s2090_s29 + $0x108] sm:$0xff] %v912_v49  ;;  %1245 = vst [vmem:[%s2090_s29 + $0x308] sm:$0xff] %v1072_v50  ;;  %v914_v53 = vadd.f32 %v913_v51, %v2084_v37  ;;  %v1074_v54 = vadd.f32 %v1073_v52, %v2084_v37 }
 0x18f   : > { %v915_v55 = vpop.f32.mrf.mxu0  ;;  %v1075_v56 = vpop.f32.mrf.mxu1 }
 0x190   : > { %1182 = vst [vmem:[%s2090_s29 + $0x110] sm:$0xff] %v914_v53  ;;  %1246 = vst [vmem:[%s2090_s29 + $0x310] sm:$0xff] %v1074_v54  ;;  %v916_v57 = vadd.f32 %v915_v55, %v2086_v38  ;;  %v1076_v58 = vadd.f32 %v1075_v56, %v2086_v38 }
 0x191   : > { %v919_v59 = vpop.f32.mrf.mxu0  ;;  %v1079_v60 = vpop.f32.mrf.mxu1 }
 0x192   : > { %1183 = vst [vmem:[%s2090_s29 + $0x118] sm:$0xff] %v916_v57  ;;  %1247 = vst [vmem:[%s2090_s29 + $0x318] sm:$0xff] %v1076_v58  ;;  %v920_v61 = vadd.f32 %v919_v59, %v2084_v37  ;;  %v1080_v62 = vadd.f32 %v1079_v60, %v2084_v37 }
 0x193   : > { %v921_v63 = vpop.f32.mrf.mxu0  ;;  %v1081_v0 = vpop.f32.mrf.mxu1 }
 0x194   : > { %1184 = vst [vmem:[%s2090_s29 + $0x120] sm:$0xff] %v920_v61  ;;  %1248 = vst [vmem:[%s2090_s29 + $0x320] sm:$0xff] %v1080_v62  ;;  %v922_v1 = vadd.f32 %v921_v63, %v2086_v38  ;;  %v1082_v2 = vadd.f32 %v1081_v0, %v2086_v38 }
 0x195   : > { %v923_v3 = vpop.f32.mrf.mxu0  ;;  %v1083_v4 = vpop.f32.mrf.mxu1 }
 0x196   : > { %1185 = vst [vmem:[%s2090_s29 + $0x128] sm:$0xff] %v922_v1  ;;  %1249 = vst [vmem:[%s2090_s29 + $0x328] sm:$0xff] %v1082_v2  ;;  %v924_v5 = vadd.f32 %v923_v3, %v2084_v37  ;;  %v1084_v6 = vadd.f32 %v1083_v4, %v2084_v37 }
 0x197   : > { %v925_v7 = vpop.f32.mrf.mxu0  ;;  %v1085_v8 = vpop.f32.mrf.mxu1 }
 0x198   : > { %1186 = vst [vmem:[%s2090_s29 + $0x130] sm:$0xff] %v924_v5  ;;  %1250 = vst [vmem:[%s2090_s29 + $0x330] sm:$0xff] %v1084_v6  ;;  %v926_v9 = vadd.f32 %v925_v7, %v2086_v38  ;;  %v1086_v10 = vadd.f32 %v1085_v8, %v2086_v38 }
 0x199   : > { %v929_v11 = vpop.f32.mrf.mxu0  ;;  %v1089_v12 = vpop.f32.mrf.mxu1 }
 0x19a   : > { %1187 = vst [vmem:[%s2090_s29 + $0x138] sm:$0xff] %v926_v9  ;;  %1251 = vst [vmem:[%s2090_s29 + $0x338] sm:$0xff] %v1086_v10  ;;  %v930_v13 = vadd.f32 %v929_v11, %v2084_v37  ;;  %v1090_v14 = vadd.f32 %v1089_v12, %v2084_v37 }
 0x19b   : > { %v931_v15 = vpop.f32.mrf.mxu0  ;;  %v1091_v16 = vpop.f32.mrf.mxu1 }
 0x19c   : > { %1188 = vst [vmem:[%s2090_s29 + $0x140] sm:$0xff] %v930_v13  ;;  %1252 = vst [vmem:[%s2090_s29 + $0x340] sm:$0xff] %v1090_v14  ;;  %v932_v17 = vadd.f32 %v931_v15, %v2086_v38  ;;  %v1092_v18 = vadd.f32 %v1091_v16, %v2086_v38 }
 0x19d   : > { %v933_v19 = vpop.f32.mrf.mxu0  ;;  %v1093_v20 = vpop.f32.mrf.mxu1 }
 0x19e   : > { %1189 = vst [vmem:[%s2090_s29 + $0x148] sm:$0xff] %v932_v17  ;;  %1253 = vst [vmem:[%s2090_s29 + $0x348] sm:$0xff] %v1092_v18  ;;  %v934_v21 = vadd.f32 %v933_v19, %v2084_v37  ;;  %v1094_v22 = vadd.f32 %v1093_v20, %v2084_v37 }
 0x19f   : > { %v935_v23 = vpop.f32.mrf.mxu0  ;;  %v1095_v24 = vpop.f32.mrf.mxu1 }
 0x1a0   : > { %1190 = vst [vmem:[%s2090_s29 + $0x150] sm:$0xff] %v934_v21  ;;  %1254 = vst [vmem:[%s2090_s29 + $0x350] sm:$0xff] %v1094_v22  ;;  %v936_v25 = vadd.f32 %v935_v23, %v2086_v38  ;;  %v1096_v26 = vadd.f32 %v1095_v24, %v2086_v38 }
 0x1a1   : > { %v939_v27 = vpop.f32.mrf.mxu0  ;;  %v1099_v28 = vpop.f32.mrf.mxu1 }
 0x1a2   : > { %1191 = vst [vmem:[%s2090_s29 + $0x158] sm:$0xff] %v936_v25  ;;  %1255 = vst [vmem:[%s2090_s29 + $0x358] sm:$0xff] %v1096_v26  ;;  %v940_v29 = vadd.f32 %v939_v27, %v2084_v37  ;;  %v1100_v30 = vadd.f32 %v1099_v28, %v2084_v37 }
 0x1a3   : > { %v941_v31 = vpop.f32.mrf.mxu0  ;;  %v1101_v32 = vpop.f32.mrf.mxu1 }
 0x1a4   : > { %1192 = vst [vmem:[%s2090_s29 + $0x160] sm:$0xff] %v940_v29  ;;  %1256 = vst [vmem:[%s2090_s29 + $0x360] sm:$0xff] %v1100_v30  ;;  %v942_v33 = vadd.f32 %v941_v31, %v2086_v38  ;;  %v1102_v34 = vadd.f32 %v1101_v32, %v2086_v38 }
 0x1a5   : > { %v943_v35 = vpop.f32.mrf.mxu0  ;;  %v1103_v36 = vpop.f32.mrf.mxu1 }
 0x1a6   : > { %1193 = vst [vmem:[%s2090_s29 + $0x168] sm:$0xff] %v942_v33  ;;  %1257 = vst [vmem:[%s2090_s29 + $0x368] sm:$0xff] %v1102_v34  ;;  %v944_v39 = vadd.f32 %v943_v35, %v2084_v37  ;;  %v1104_v40 = vadd.f32 %v1103_v36, %v2084_v37 }
 0x1a7   : > { %v945_v41 = vpop.f32.mrf.mxu0  ;;  %v1105_v42 = vpop.f32.mrf.mxu1 }
 0x1a8   : > { %1194 = vst [vmem:[%s2090_s29 + $0x170] sm:$0xff] %v944_v39  ;;  %1258 = vst [vmem:[%s2090_s29 + $0x370] sm:$0xff] %v1104_v40  ;;  %v946_v43 = vadd.f32 %v945_v41, %v2086_v38  ;;  %v1106_v44 = vadd.f32 %v1105_v42, %v2086_v38 }
 0x1a9   : > { %v949_v45 = vpop.f32.mrf.mxu0  ;;  %v1109_v46 = vpop.f32.mrf.mxu1 }
 0x1aa   : > { %1195 = vst [vmem:[%s2090_s29 + $0x178] sm:$0xff] %v946_v43  ;;  %1259 = vst [vmem:[%s2090_s29 + $0x378] sm:$0xff] %v1106_v44  ;;  %v950_v47 = vadd.f32 %v949_v45, %v2084_v37  ;;  %v1110_v48 = vadd.f32 %v1109_v46, %v2084_v37 }
 0x1ab   : > { %v951_v49 = vpop.f32.mrf.mxu0  ;;  %v1111_v50 = vpop.f32.mrf.mxu1 }
 0x1ac   : > { %1196 = vst [vmem:[%s2090_s29 + $0x180] sm:$0xff] %v950_v47  ;;  %1260 = vst [vmem:[%s2090_s29 + $0x380] sm:$0xff] %v1110_v48  ;;  %v952_v51 = vadd.f32 %v951_v49, %v2086_v38  ;;  %v1112_v52 = vadd.f32 %v1111_v50, %v2086_v38 }
 0x1ad   : > { %v953_v53 = vpop.f32.mrf.mxu0  ;;  %v1113_v54 = vpop.f32.mrf.mxu1 }
 0x1ae   : > { %1197 = vst [vmem:[%s2090_s29 + $0x188] sm:$0xff] %v952_v51  ;;  %1261 = vst [vmem:[%s2090_s29 + $0x388] sm:$0xff] %v1112_v52  ;;  %v954_v55 = vadd.f32 %v953_v53, %v2084_v37  ;;  %v1114_v56 = vadd.f32 %v1113_v54, %v2084_v37 }
 0x1af   : > { %v955_v57 = vpop.f32.mrf.mxu0  ;;  %v1115_v58 = vpop.f32.mrf.mxu1 }
 0x1b0   : > { %1198 = vst [vmem:[%s2090_s29 + $0x190] sm:$0xff] %v954_v55  ;;  %1262 = vst [vmem:[%s2090_s29 + $0x390] sm:$0xff] %v1114_v56  ;;  %v956_v59 = vadd.f32 %v955_v57, %v2086_v38  ;;  %v1116_v60 = vadd.f32 %v1115_v58, %v2086_v38 }
 0x1b1   : > { %v959_v61 = vpop.f32.mrf.mxu0  ;;  %v1119_v62 = vpop.f32.mrf.mxu1 }
 0x1b2   : > { %1199 = vst [vmem:[%s2090_s29 + $0x198] sm:$0xff] %v956_v59  ;;  %1263 = vst [vmem:[%s2090_s29 + $0x398] sm:$0xff] %v1116_v60  ;;  %v960_v63 = vadd.f32 %v959_v61, %v2084_v37  ;;  %v1120_v0 = vadd.f32 %v1119_v62, %v2084_v37 }
 0x1b3   : > { %v961_v1 = vpop.f32.mrf.mxu0  ;;  %v1121_v2 = vpop.f32.mrf.mxu1 }
 0x1b4   : > { %1200 = vst [vmem:[%s2090_s29 + $0x1a0] sm:$0xff] %v960_v63  ;;  %1264 = vst [vmem:[%s2090_s29 + $0x3a0] sm:$0xff] %v1120_v0  ;;  %v962_v3 = vadd.f32 %v961_v1, %v2086_v38  ;;  %v1122_v4 = vadd.f32 %v1121_v2, %v2086_v38 }
 0x1b5   : > { %v963_v5 = vpop.f32.mrf.mxu0  ;;  %v1123_v6 = vpop.f32.mrf.mxu1 }
 0x1b6   : > { %1201 = vst [vmem:[%s2090_s29 + $0x1a8] sm:$0xff] %v962_v3  ;;  %1265 = vst [vmem:[%s2090_s29 + $0x3a8] sm:$0xff] %v1122_v4  ;;  %v964_v7 = vadd.f32 %v963_v5, %v2084_v37  ;;  %v1124_v8 = vadd.f32 %v1123_v6, %v2084_v37 }
 0x1b7   : > { %v965_v9 = vpop.f32.mrf.mxu0  ;;  %v1125_v10 = vpop.f32.mrf.mxu1 }
 0x1b8   : > { %1202 = vst [vmem:[%s2090_s29 + $0x1b0] sm:$0xff] %v964_v7  ;;  %1266 = vst [vmem:[%s2090_s29 + $0x3b0] sm:$0xff] %v1124_v8  ;;  %v966_v11 = vadd.f32 %v965_v9, %v2086_v38  ;;  %v1126_v12 = vadd.f32 %v1125_v10, %v2086_v38 }
 0x1b9   : > { %v969_v13 = vpop.f32.mrf.mxu0  ;;  %v1129_v14 = vpop.f32.mrf.mxu1 }
 0x1ba   : > { %1203 = vst [vmem:[%s2090_s29 + $0x1b8] sm:$0xff] %v966_v11  ;;  %1267 = vst [vmem:[%s2090_s29 + $0x3b8] sm:$0xff] %v1126_v12  ;;  %v970_v15 = vadd.f32 %v969_v13, %v2084_v37  ;;  %v1130_v16 = vadd.f32 %v1129_v14, %v2084_v37 }
 0x1bb   : > { %v971_v17 = vpop.f32.mrf.mxu0  ;;  %v1131_v18 = vpop.f32.mrf.mxu1 }
 0x1bc   : > { %1204 = vst [vmem:[%s2090_s29 + $0x1c0] sm:$0xff] %v970_v15  ;;  %1268 = vst [vmem:[%s2090_s29 + $0x3c0] sm:$0xff] %v1130_v16  ;;  %v972_v19 = vadd.f32 %v971_v17, %v2086_v38  ;;  %v1132_v20 = vadd.f32 %v1131_v18, %v2086_v38 }
 0x1bd   : > { %v973_v21 = vpop.f32.mrf.mxu0  ;;  %v1133_v22 = vpop.f32.mrf.mxu1 }
 0x1be   : > { %1205 = vst [vmem:[%s2090_s29 + $0x1c8] sm:$0xff] %v972_v19  ;;  %1269 = vst [vmem:[%s2090_s29 + $0x3c8] sm:$0xff] %v1132_v20  ;;  %v974_v23 = vadd.f32 %v973_v21, %v2084_v37  ;;  %v1134_v24 = vadd.f32 %v1133_v22, %v2084_v37 }
 0x1bf   : > { %v975_v25 = vpop.f32.mrf.mxu0  ;;  %v1135_v26 = vpop.f32.mrf.mxu1 }
 0x1c0   : > { %1206 = vst [vmem:[%s2090_s29 + $0x1d0] sm:$0xff] %v974_v23  ;;  %1270 = vst [vmem:[%s2090_s29 + $0x3d0] sm:$0xff] %v1134_v24  ;;  %v976_v27 = vadd.f32 %v975_v25, %v2086_v38  ;;  %v1136_v28 = vadd.f32 %v1135_v26, %v2086_v38 }
 0x1c1   : > { %v979_v29 = vpop.f32.mrf.mxu0  ;;  %v1139_v30 = vpop.f32.mrf.mxu1 }
 0x1c2   : > { %1207 = vst [vmem:[%s2090_s29 + $0x1d8] sm:$0xff] %v976_v27  ;;  %1271 = vst [vmem:[%s2090_s29 + $0x3d8] sm:$0xff] %v1136_v28  ;;  %v980_v31 = vadd.f32 %v979_v29, %v2084_v37  ;;  %v1140_v32 = vadd.f32 %v1139_v30, %v2084_v37 }
 0x1c3   : > { %v981_v33 = vpop.f32.mrf.mxu0  ;;  %v1141_v34 = vpop.f32.mrf.mxu1 }
 0x1c4   : > { %1208 = vst [vmem:[%s2090_s29 + $0x1e0] sm:$0xff] %v980_v31  ;;  %1272 = vst [vmem:[%s2090_s29 + $0x3e0] sm:$0xff] %v1140_v32  ;;  %v982_v35 = vadd.f32 %v981_v33, %v2086_v38  ;;  %v1142_v36 = vadd.f32 %v1141_v34, %v2086_v38 }
 0x1c5   : > { %v983_v39 = vpop.f32.mrf.mxu0  ;;  %v1143_v40 = vpop.f32.mrf.mxu1 }
 0x1c6   : > { %1209 = vst [vmem:[%s2090_s29 + $0x1e8] sm:$0xff] %v982_v35  ;;  %1273 = vst [vmem:[%s2090_s29 + $0x3e8] sm:$0xff] %v1142_v36  ;;  %v984_v41 = vadd.f32 %v983_v39, %v2084_v37  ;;  %v1144_v42 = vadd.f32 %v1143_v40, %v2084_v37 }
 0x1c7   : > { %v985_v43 = vpop.f32.mrf.mxu0  ;;  %v1145_v44 = vpop.f32.mrf.mxu1 }
 0x1c8   : > { %1210 = vst [vmem:[%s2090_s29 + $0x1f0] sm:$0xff] %v984_v41  ;;  %1274 = vst [vmem:[%s2090_s29 + $0x3f0] sm:$0xff] %v1144_v42  ;;  %v986_v45 = vadd.f32 %v985_v43, %v2086_v38  ;;  %v1146_v46 = vadd.f32 %v1145_v44, %v2086_v38 }
 0x1ca   : > { %1211 = vst [vmem:[%s2090_s29 + $0x1f8] sm:$0xff] %v986_v45  ;;  %1275 = vst [vmem:[%s2090_s29 + $0x3f8] sm:$0xff] %v1146_v46 }
 0x1cb   : > { %1796 = shalt.err (!%p1793_p0)
}
 0x1cc   : > { %s1797_s21 = scalar_lea.hbm %s2345_s8, 16384  ;;  %s1801_s4 = scalar_lea.hbm %s2399_s3, 32768 }
 0x1cd   : > { %p1798_p5 = scmp.ne.s32.totalorder %s2345_s8, %s1797_s21  ;;  %p1802_p4 = scmp.lt.s32.totalorder %s2345_s8, %s2399_s3 }
 0x1ce   : > { %p1803_p6 = scmp.lt.s32.totalorder %s1801_s4, %s1797_s21 }
 0x1cf   : > { %p1799_p2 = pnand %p1798_p5, %p2415_p11 }
 0x1d0   : > { %p1804_p8 = por %p1803_p6, %p1802_p4 }
 0x1d1   : > { %p1800_p1 = pneg %p1799_p2 }
 0x1d3   : > { %p1805_p3 = pnand %p1804_p8, %p1800_p1 }
 0x1d5   : > { %1808 = shalt.err (!%p1805_p3)
}
 0x1d6   : > { %s1858_s28 = smov 256   ;;  %s1859_s29 = smov 16  }
 0x1d7   : > { %1530 = dma.vmem_to_hbm [thread:$0]  (%p2415_p11), %s2347_s22, 16384, %s2345_s8, %s1277_s16, %s1858_s28, %s1858_s28, %s1859_s29  }
 0x1d8 PF: > { %s1306_s17 = sand.u32 1, %s1839_s12   ;;  %p2416_p7 = scmp.ne.s32.totalorder %s2405_s19, 0 }
 0x1d9   : > { %p2417_p9 = scmp.ge.s32.totalorder %s1851_s15, 2  ;;  %s1307_s23 = scalar_lea.sflag [#allocation4], %s1306_s17 }
 0x1db   : > { %p1541_p10 = pnand %p2417_p9, %p2416_p7 }
 0x1dd   : > { %p1542_p12 = pneg %p1541_p10 }
 0x1df   : > { %1834 = dma.done.wait (%p1542_p12), %s1307_s23, 16384  }
 0x1e0   : > { %1836 = vsyncadd (%p1542_p12), %s1307_s23, 4294950912  ;;  %p17_p13 = scmp.ge.s32.totalorder %s1934_s24, 4   ;;  %s2418_s12 = smov %s1843_s13 }
 0x1e1   : > { %s2419_s13 = smov %s1847_s14  ;;  %s2420_s14 = smov %s1954_s5 }
 0x1e2   : > { %s2421_s15 = smov %s1934_s24  ;;  %19 = sbr.rel (!%p17_p13) target bundleno = 6 (0x6), region = 81 }
 0x1e7   :  { %1312 = vsyncpa [#allocation3], 1 }
 0x1e8   :  { %1314 = vsyncpa [#allocation3 + $0x1], 1 }
 0x1e9   :  { %1315 = vsyncpa [#allocation6], 1 }
 0x1ea   :  { %1316 = vsyncpa [#allocation4], 1 }
 0x1eb   :  { %1318 = vsyncpa [#allocation4 + $0x1], 1 }

</bundles_post_ra>
